<compile_context>
chip_gen: v7x
topology: tpu7x:2x2x1
jax: 0.10.0
libtpu: 0.0.40
codegen_flags: <defaults>
</compile_context>

<pallas_src>
import functools

import jax
import jax.numpy as jnp
from jax.experimental import pallas as pl
from jax.experimental.pallas import tpu as pltpu


def _round_up(x, m):
    return (x + m - 1) // m * m


# --------------------------------------------------------------------------
# Small-graph path: single fused kernel (A, X and all weights VMEM-resident).
# --------------------------------------------------------------------------
def fused_gcn_kernel(a_ref, x_ref, w1_ref, b1_ref, w2_ref, wc_ref, bc_ref,
                     out_ref):
    a = a_ref[...]                                                    # bf16
    # conv1 feature transform (BN scale pre-folded into W1)
    xw1 = jnp.dot(x_ref[...], w1_ref[...],
                  preferred_element_type=jnp.float32)                 # [N, Hp]
    # hop 1 + folded (conv1 bias + BN) bias + ReLU
    h1 = jnp.dot(a, xw1.astype(jnp.bfloat16),
                 preferred_element_type=jnp.float32) + b1_ref[...]
    h1 = jnp.maximum(h1, 0.0)
    # TODO(synk): dropout is identity (eval mode); training-mode dropout not implemented.
    # conv2 feature transform
    hw2 = jnp.dot(h1.astype(jnp.bfloat16), w2_ref[...],
                  preferred_element_type=jnp.float32)                 # [N, F2p]
    # hop 2
    h2 = jnp.dot(a, hw2.astype(jnp.bfloat16),
                 preferred_element_type=jnp.float32)
    # classifier (conv2 bias folded into bc)
    out_ref[...] = jnp.dot(h2.astype(jnp.bfloat16), wc_ref[...],
                           preferred_element_type=jnp.float32) + bc_ref[...]


# --------------------------------------------------------------------------
# Large-graph path, kernel 1 (hop 1 with fused feature transform):
#   HW2 = ReLU(A @ (X @ (W1*scale)) + bias) @ W2
#   grid = (row tiles, K tiles); K is the accumulation ("arbitrary") axis.
# --------------------------------------------------------------------------
def hop1_kernel(a_ref, x_ref, w1_ref, b1_ref, w2_ref, out_ref, acc_ref):
    k = pl.program_id(1)

    @pl.when(k == 0)
    def _():
        acc_ref[...] = jnp.zeros_like(acc_ref)

    # (tk, Hp) feature-transform slab, recomputed per K step (f_in is tiny).
    xw1 = jnp.dot(x_ref[...], w1_ref[...], preferred_element_type=jnp.float32)
    acc_ref[...] += jnp.dot(a_ref[...], xw1.astype(jnp.bfloat16),
                            preferred_element_type=jnp.float32)

    @pl.when(k == pl.num_programs(1) - 1)
    def _():
        h1 = jnp.maximum(acc_ref[...] + b1_ref[...], 0.0)   # folded BN+bias, ReLU
        # TODO(synk): dropout is identity (eval mode); training dropout not implemented.
        out_ref[...] = jnp.dot(h1.astype(jnp.bfloat16), w2_ref[...],
                               preferred_element_type=jnp.float32
                               ).astype(out_ref.dtype)


# --------------------------------------------------------------------------
# Large-graph path, kernel 2 (hop 2 + classifier):
#   OUT = (A @ HW2) @ Wc_pad + bc_eff_pad    (b2 folded into bc_eff)
# --------------------------------------------------------------------------
def hop2_kernel(a_ref, hw_ref, wc_ref, bc_ref, out_ref, acc_ref):
    k = pl.program_id(1)

    @pl.when(k == 0)
    def _():
        acc_ref[...] = jnp.zeros_like(acc_ref)

    acc_ref[...] += jnp.dot(a_ref[...], hw_ref[...],
                            preferred_element_type=jnp.float32)

    @pl.when(k == pl.num_programs(1) - 1)
    def _():
        out_ref[...] = (
            jnp.dot(acc_ref[...].astype(jnp.bfloat16), wc_ref[...],
                    preferred_element_type=jnp.float32)
            + bc_ref[...]
        )


# --------------------------------------------------------------------------
# Forward wrapper
# --------------------------------------------------------------------------
def gcn_forward(a_hat, x, params, *, force_tiled=False):
    n, f_in = x.shape
    h = params["w1"].shape[1]
    out_feat = params["w2"].shape[1]
    n_classes = params["wc"].shape[1]

    # ---- lane-dense padding of all feature dims ---------------------------
    fin_pad = _round_up(f_in, 128)
    h_pad = _round_up(h, 128)
    f2_pad = _round_up(out_feat, 128)
    c_pad = _round_up(n_classes, 128)

    use_fused = (not force_tiled) and n <= 1024
    if use_fused:
        n_pad = _round_up(n, 128)
    else:
        n_pad = _round_up(n, 256)
        tm = 256                                     # >= 2 row tiles => megacore
        tk = next(c for c in (2048, 1024, 512, 256) if n_pad % c == 0)
        # keep the double-buffered (tk, fin_pad) X K-slab under ~8 MiB
        while tk > 256 and 2 * tk * fin_pad * 2 > (8 << 20):
            tk //= 2

    # ---- host-side folding / padding / casting ----------------------------
    eps = 1e-5
    scale = params["gamma"] * jax.lax.rsqrt(params["var"] + eps)        # [1, H]
    bias = params["beta"] + (params["b1"] - params["mean"]) * scale     # [1, H]
    w1_eff = params["w1"] * scale                    # BN scale folded into W1

    a_p = jnp.zeros((n_pad, n_pad), jnp.bfloat16).at[:n, :n].set(
        a_hat.astype(jnp.bfloat16))
    x_p = jnp.zeros((n_pad, fin_pad), jnp.bfloat16).at[:n, :f_in].set(
        x.astype(jnp.bfloat16))
    w1_p = jnp.zeros((fin_pad, h_pad), jnp.bfloat16).at[:f_in, :h].set(
        w1_eff.astype(jnp.bfloat16))
    b1_p = jnp.zeros((1, h_pad), jnp.float32).at[:, :h].set(bias)
    w2_p = jnp.zeros((h_pad, f2_pad), jnp.bfloat16).at[:h, :out_feat].set(
        params["w2"].astype(jnp.bfloat16))
    wc_p = jnp.zeros((f2_pad, c_pad), jnp.bfloat16).at[:out_feat, :n_classes].set(
        params["wc"].astype(jnp.bfloat16))
    bc_eff = jnp.dot(params["b2"], params["wc"]) + params["bc"]         # [1, C]
    bc_p = jnp.zeros((1, c_pad), jnp.float32).at[:, :n_classes].set(bc_eff)

    vmem_lim = 32 * 1024 * 1024

    # ---- small-graph fused path --------------------------------------------
    if use_fused:
        def full(shape):
            return pl.BlockSpec(shape, lambda i: (0, 0))

        out_p = pl.pallas_call(
            fused_gcn_kernel,
            out_shape=jax.ShapeDtypeStruct((n_pad, c_pad), jnp.float32),
            grid_spec=pltpu.PrefetchScalarGridSpec(
                num_scalar_prefetch=0,
                grid=(1,),
                in_specs=[
                    full((n_pad, n_pad)),      # A (bf16, resident)
                    full((n_pad, fin_pad)),    # X
                    full((fin_pad, h_pad)),    # W1 * BN scale
                    full((1, h_pad)),          # folded bias
                    full((h_pad, f2_pad)),     # W2
                    full((f2_pad, c_pad)),     # Wc
                    full((1, c_pad)),          # folded classifier bias
                ],
                out_specs=full((n_pad, c_pad)),
            ),
            compiler_params=pltpu.CompilerParams(
                dimension_semantics=("arbitrary",),
                vmem_limit_bytes=vmem_lim),
            cost_estimate=pl.CostEstimate(
                flops=2 * n_pad * (fin_pad * h_pad + n_pad * h_pad
                                   + h_pad * f2_pad + n_pad * f2_pad
                                   + f2_pad * c_pad),
                transcendentals=0,
                bytes_accessed=int(n_pad * n_pad * 2 + n_pad * fin_pad * 2
                                   + n_pad * c_pad * 4),
            ),
        )(a_p, x_p, w1_p, b1_p, w2_p, wc_p, bc_p)
        return out_p[:n, :n_classes]

    # ---- large-graph tiled path --------------------------------------------
    grid = (n_pad // tm, n_pad // tk)
    dimsem = ("parallel", "arbitrary")
    n_row_tiles = n_pad // tm

    hw2 = pl.pallas_call(
        hop1_kernel,
        out_shape=jax.ShapeDtypeStruct((n_pad, f2_pad), jnp.bfloat16),
        grid_spec=pltpu.PrefetchScalarGridSpec(
            num_scalar_prefetch=0,
            grid=grid,
            in_specs=[
                pl.BlockSpec((tm, tk), lambda i, k: (i, k)),          # A tile (bf16)
                pl.BlockSpec((tk, fin_pad), lambda i, k: (k, 0)),     # X K-slab
                pl.BlockSpec((fin_pad, h_pad), lambda i, k: (0, 0)),  # W1*scale (resident)
                pl.BlockSpec((1, h_pad), lambda i, k: (0, 0)),        # folded bias
                pl.BlockSpec((h_pad, f2_pad), lambda i, k: (0, 0)),   # W2 (resident)
            ],
            out_specs=pl.BlockSpec((tm, f2_pad), lambda i, k: (i, 0)),
            scratch_shapes=[pltpu.VMEM((tm, h_pad), jnp.float32)],
        ),
        compiler_params=pltpu.CompilerParams(
            dimension_semantics=dimsem, vmem_limit_bytes=vmem_lim),
        cost_estimate=pl.CostEstimate(
            flops=2 * n_pad * n_pad * h_pad
                  + 2 * n_row_tiles * n_pad * fin_pad * h_pad
                  + 2 * n_pad * h_pad * f2_pad,
            transcendentals=0,
            bytes_accessed=int(n_pad * n_pad * 2
                               + n_row_tiles * n_pad * fin_pad * 2
                               + n_pad * f2_pad * 2),
        ),
    )(a_p, x_p, w1_p, b1_p, w2_p)

    out_p = pl.pallas_call(
        hop2_kernel,
        out_shape=jax.ShapeDtypeStruct((n_pad, c_pad), jnp.float32),
        grid_spec=pltpu.PrefetchScalarGridSpec(
            num_scalar_prefetch=0,
            grid=grid,
            in_specs=[
                pl.BlockSpec((tm, tk), lambda i, k: (i, k)),          # A tile (bf16)
                pl.BlockSpec((tk, f2_pad), lambda i, k: (k, 0)),      # HW2 K-slab
                pl.BlockSpec((f2_pad, c_pad), lambda i, k: (0, 0)),   # Wc (resident)
                pl.BlockSpec((1, c_pad), lambda i, k: (0, 0)),        # folded biases
            ],
            out_specs=pl.BlockSpec((tm, c_pad), lambda i, k: (i, 0)),
            scratch_shapes=[pltpu.VMEM((tm, f2_pad), jnp.float32)],
        ),
        compiler_params=pltpu.CompilerParams(
            dimension_semantics=dimsem, vmem_limit_bytes=vmem_lim),
        cost_estimate=pl.CostEstimate(
            flops=2 * n_pad * n_pad * f2_pad + 2 * n_pad * f2_pad * c_pad,
            transcendentals=0,
            bytes_accessed=int(n_pad * n_pad * 2
                               + n_row_tiles * n_pad * f2_pad * 2
                               + n_pad * c_pad * 4),
        ),
    )(a_p, hw2, wc_p, bc_p)

    return out_p[:n, :n_classes]


# --------------------------------------------------------------------------
# Graph preprocessing + params
# --------------------------------------------------------------------------
def build_normalized_adj(edge_index, num_nodes):
    """Dense D^-1/2 (A + I) D^-1/2 from a [2, E] edge_index (src row 0, dst row 1)."""
    src = edge_index[0]
    dst = edge_index[1]
    a = jnp.zeros((num_nodes, num_nodes), jnp.float32)
    a = a.at[dst, src].add(1.0)                       # message flows src -> dst
    a = a + jnp.eye(num_nodes, dtype=jnp.float32)     # add self-loops
    deg = a.sum(axis=1)
    d_inv_sqrt = jnp.where(deg > 0, jax.lax.rsqrt(deg), 0.0)
    return d_inv_sqrt[:, None] * a * d_inv_sqrt[None, :]


def init_params(key, in_feat, h_feat, out_feat, num_layers):
    ks = jax.random.split(key, 8)
    scale1 = 1.0 / jnp.sqrt(in_feat)
    scale2 = 1.0 / jnp.sqrt(h_feat)
    scale3 = 1.0 / jnp.sqrt(out_feat)
    return {
        # GCNConv 1
        "w1": jax.random.uniform(ks[0], (in_feat, h_feat), jnp.float32, -scale1, scale1),
        "b1": jnp.zeros((1, h_feat), jnp.float32),
        # BatchNorm1d(h_feat) — affine params + running stats (inference mode)
        "gamma": jnp.ones((1, h_feat), jnp.float32),
        "beta": jnp.zeros((1, h_feat), jnp.float32),
        "mean": 0.1 * jax.random.normal(ks[1], (1, h_feat), jnp.float32),
        "var": jnp.ones((1, h_feat), jnp.float32)
               + 0.05 * jax.random.uniform(ks[2], (1, h_feat), jnp.float32),
        # GCNConv 2
        "w2": jax.random.uniform(ks[3], (h_feat, out_feat), jnp.float32, -scale2, scale2),
        "b2": jnp.zeros((1, out_feat), jnp.float32),
        # Linear classifier
        "wc": jax.random.uniform(ks[4], (out_feat, num_layers), jnp.float32, -scale3, scale3),
        "bc": jax.random.uniform(ks[5], (1, num_layers), jnp.float32, -scale3, scale3),
    }


def gcn_reference(a_hat, x, params):
    """Pure-JAX f32 reference of the module's forward (eval mode)."""
    h1 = a_hat @ (x @ params["w1"]) + params["b1"]
    inv_std = jax.lax.rsqrt(params["var"] + 1e-5)
    h1 = (h1 - params["mean"]) * inv_std * params["gamma"] + params["beta"]
    h1 = jnp.maximum(h1, 0.0)
    h2 = a_hat @ (h1 @ params["w2"]) + params["b2"]
    return h2 @ params["wc"] + params["bc"]


if __name__ == "__main__":
    # Small, module-consistent shapes
    N_NODES = 16
    IN_FEAT, H_FEAT, OUT_FEAT, NUM_LAYERS = 8, 32, 16, 4

    key = jax.random.PRNGKey(0)
    k_x, k_e, k_p = jax.random.split(key, 3)

    # Node features `seq`: [N, in_feat]
    seq = jax.random.normal(k_x, (N_NODES, IN_FEAT), jnp.float32)

    # Random undirected edge_index: [2, E]
    n_dir = 40
    src = jax.random.randint(k_e, (n_dir,), 0, N_NODES)
    dst = jax.random.randint(jax.random.fold_in(k_e, 1), (n_dir,), 0, N_NODES)
    edge_index = jnp.stack([jnp.concatenate([src, dst]),
                            jnp.concatenate([dst, src])], axis=0)  # [2, 80]

    a_hat = build_normalized_adj(edge_index, N_NODES)
    params = init_params(k_p, IN_FEAT, H_FEAT, OUT_FEAT, NUM_LAYERS)
    ref = gcn_reference(a_hat, seq, params)

    # (1) small-graph fused path (default for this size)
    fwd_fused = jax.jit(functools.partial(gcn_forward, force_tiled=False))
    out_fused = jax.block_until_ready(fwd_fused(a_hat, seq, params))
    assert out_fused.shape == (N_NODES, NUM_LAYERS)
    assert bool(jnp.all(jnp.isfinite(out_fused)))
    assert float(jnp.max(jnp.abs(out_fused - ref))) < 0.25

    # (2) large-graph tiled path (forced, to validate the K-accumulated kernels)
    fwd_tiled = jax.jit(functools.partial(gcn_forward, force_tiled=True))
    out_tiled = jax.block_until_ready(fwd_tiled(a_hat, seq, params))
    assert out_tiled.shape == (N_NODES, NUM_LAYERS)
    assert bool(jnp.all(jnp.isfinite(out_tiled)))
    assert float(jnp.max(jnp.abs(out_tiled - ref))) < 0.25

    print("KERNEL_OK")
</pallas_src>

<mosaic_0001>
module attributes {stable_mosaic.version = 11 : i64} {
  func.func @fused_gcn_kernel(%arg0: i32, %arg1: memref<128x128xbf16, #tpu.memory_space<vmem>>, %arg2: memref<128x128xbf16, #tpu.memory_space<vmem>>, %arg3: memref<128x128xbf16, #tpu.memory_space<vmem>>, %arg4: memref<1x128xf32, #tpu.memory_space<vmem>>, %arg5: memref<128x128xbf16, #tpu.memory_space<vmem>>, %arg6: memref<128x128xbf16, #tpu.memory_space<vmem>>, %arg7: memref<1x128xf32, #tpu.memory_space<vmem>>, %arg8: memref<128x128xf32, #tpu.memory_space<vmem>>) attributes {dimension_semantics = [#tpu.dimension_semantics<arbitrary>], iteration_bounds = array<i64: 1>, scalar_prefetch = 0 : i64, scratch_operands = 0 : i64, tpu.core_type = #tpu.core_type<tc>, window_params = [{pipeline_mode = #tpu.pipeline_mode<synchronous>, transform_indices = @transform_0, window_bounds = array<i64: 128, 128>}, {pipeline_mode = #tpu.pipeline_mode<synchronous>, transform_indices = @transform_1, window_bounds = array<i64: 128, 128>}, {pipeline_mode = #tpu.pipeline_mode<synchronous>, transform_indices = @transform_2, window_bounds = array<i64: 128, 128>}, {pipeline_mode = #tpu.pipeline_mode<synchronous>, transform_indices = @transform_3, window_bounds = array<i64: 1, 128>}, {pipeline_mode = #tpu.pipeline_mode<synchronous>, transform_indices = @transform_4, window_bounds = array<i64: 128, 128>}, {pipeline_mode = #tpu.pipeline_mode<synchronous>, transform_indices = @transform_5, window_bounds = array<i64: 128, 128>}, {pipeline_mode = #tpu.pipeline_mode<synchronous>, transform_indices = @transform_6, window_bounds = array<i64: 1, 128>}, {pipeline_mode = #tpu.pipeline_mode<synchronous>, transform_indices = @transform_7, window_bounds = array<i64: 128, 128>}]} {
    %c0 = arith.constant 0 : index
    %c0_0 = arith.constant 0 : index
    %0 = vector.load %arg1[%c0, %c0_0] : memref<128x128xbf16, #tpu.memory_space<vmem>>, vector<128x128xbf16>
    %c0_1 = arith.constant 0 : index
    %c0_2 = arith.constant 0 : index
    %1 = vector.load %arg2[%c0_1, %c0_2] : memref<128x128xbf16, #tpu.memory_space<vmem>>, vector<128x128xbf16>
    %c0_3 = arith.constant 0 : index
    %c0_4 = arith.constant 0 : index
    %2 = vector.load %arg3[%c0_3, %c0_4] : memref<128x128xbf16, #tpu.memory_space<vmem>>, vector<128x128xbf16>
    %cst = arith.constant dense<0.000000e+00> : vector<128x128xf32>
    %3 = tpu.matmul %1, %2, %cst {dimension_numbers = #tpu.dot_dimension_numbers<[1], [0], [0], [1], [0, 0, 1, 1], [], []>} : vector<128x128xbf16>, vector<128x128xbf16>, vector<128x128xf32> -> vector<128x128xf32>
    %4 = arith.truncf %3 : vector<128x128xf32> to vector<128x128xbf16>
    %cst_5 = arith.constant dense<0.000000e+00> : vector<128x128xf32>
    %5 = tpu.matmul %0, %4, %cst_5 {dimension_numbers = #tpu.dot_dimension_numbers<[1], [0], [0], [1], [0, 0, 1, 1], [], []>} : vector<128x128xbf16>, vector<128x128xbf16>, vector<128x128xf32> -> vector<128x128xf32>
    %c0_6 = arith.constant 0 : index
    %c0_7 = arith.constant 0 : index
    %6 = vector.load %arg4[%c0_6, %c0_7] : memref<1x128xf32, #tpu.memory_space<vmem>>, vector<1x128xf32>
    %7 = vector.broadcast %6 : vector<1x128xf32> to vector<128x128xf32>
    %8 = arith.addf %5, %7 : vector<128x128xf32>
    %cst_8 = arith.constant 0.000000e+00 : f32
    %9 = vector.broadcast %cst_8 : f32 to vector<128x128xf32>
    %10 = arith.maximumf %8, %9 : vector<128x128xf32>
    %11 = arith.truncf %10 : vector<128x128xf32> to vector<128x128xbf16>
    %c0_9 = arith.constant 0 : index
    %c0_10 = arith.constant 0 : index
    %12 = vector.load %arg5[%c0_9, %c0_10] : memref<128x128xbf16, #tpu.memory_space<vmem>>, vector<128x128xbf16>
    %cst_11 = arith.constant dense<0.000000e+00> : vector<128x128xf32>
    %13 = tpu.matmul %11, %12, %cst_11 {dimension_numbers = #tpu.dot_dimension_numbers<[1], [0], [0], [1], [0, 0, 1, 1], [], []>} : vector<128x128xbf16>, vector<128x128xbf16>, vector<128x128xf32> -> vector<128x128xf32>
    %14 = arith.truncf %13 : vector<128x128xf32> to vector<128x128xbf16>
    %cst_12 = arith.constant dense<0.000000e+00> : vector<128x128xf32>
    %15 = tpu.matmul %0, %14, %cst_12 {dimension_numbers = #tpu.dot_dimension_numbers<[1], [0], [0], [1], [0, 0, 1, 1], [], []>} : vector<128x128xbf16>, vector<128x128xbf16>, vector<128x128xf32> -> vector<128x128xf32>
    %16 = arith.truncf %15 : vector<128x128xf32> to vector<128x128xbf16>
    %c0_13 = arith.constant 0 : index
    %c0_14 = arith.constant 0 : index
    %17 = vector.load %arg6[%c0_13, %c0_14] : memref<128x128xbf16, #tpu.memory_space<vmem>>, vector<128x128xbf16>
    %cst_15 = arith.constant dense<0.000000e+00> : vector<128x128xf32>
    %18 = tpu.matmul %16, %17, %cst_15 {dimension_numbers = #tpu.dot_dimension_numbers<[1], [0], [0], [1], [0, 0, 1, 1], [], []>} : vector<128x128xbf16>, vector<128x128xbf16>, vector<128x128xf32> -> vector<128x128xf32>
    %c0_16 = arith.constant 0 : index
    %c0_17 = arith.constant 0 : index
    %19 = vector.load %arg7[%c0_16, %c0_17] : memref<1x128xf32, #tpu.memory_space<vmem>>, vector<1x128xf32>
    %20 = vector.broadcast %19 : vector<1x128xf32> to vector<128x128xf32>
    %21 = arith.addf %18, %20 : vector<128x128xf32>
    %c0_18 = arith.constant 0 : index
    %c0_19 = arith.constant 0 : index
    %22 = vector.load %arg8[%c0_18, %c0_19] : memref<128x128xf32, #tpu.memory_space<vmem>>, vector<128x128xf32>
    tpu.vector_store %arg8[%c0_18, %c0_19], %21 {strides = array<i32>} : memref<128x128xf32, #tpu.memory_space<vmem>>, vector<128x128xf32>,
    return
  }
  func.func @transform_0(%arg0: i32) -> (i32, i32) {
    %c0_i32 = arith.constant 0 : i32
    %c0_i32_0 = arith.constant 0 : i32
    %c0_i32_1 = arith.constant 0 : i32
    return %c0_i32, %c0_i32_0 : i32, i32
  }
  func.func @transform_1(%arg0: i32) -> (i32, i32) {
    %c0_i32 = arith.constant 0 : i32
    %c0_i32_0 = arith.constant 0 : i32
    %c0_i32_1 = arith.constant 0 : i32
    return %c0_i32, %c0_i32_0 : i32, i32
  }
  func.func @transform_2(%arg0: i32) -> (i32, i32) {
    %c0_i32 = arith.constant 0 : i32
    %c0_i32_0 = arith.constant 0 : i32
    %c0_i32_1 = arith.constant 0 : i32
    return %c0_i32, %c0_i32_0 : i32, i32
  }
  func.func @transform_3(%arg0: i32) -> (i32, i32) {
    %c0_i32 = arith.constant 0 : i32
    %c0_i32_0 = arith.constant 0 : i32
    %c0_i32_1 = arith.constant 0 : i32
    return %c0_i32, %c0_i32_0 : i32, i32
  }
  func.func @transform_4(%arg0: i32) -> (i32, i32) {
    %c0_i32 = arith.constant 0 : i32
    %c0_i32_0 = arith.constant 0 : i32
    %c0_i32_1 = arith.constant 0 : i32
    return %c0_i32, %c0_i32_0 : i32, i32
  }
  func.func @transform_5(%arg0: i32) -> (i32, i32) {
    %c0_i32 = arith.constant 0 : i32
    %c0_i32_0 = arith.constant 0 : i32
    %c0_i32_1 = arith.constant 0 : i32
    return %c0_i32, %c0_i32_0 : i32, i32
  }
  func.func @transform_6(%arg0: i32) -> (i32, i32) {
    %c0_i32 = arith.constant 0 : i32
    %c0_i32_0 = arith.constant 0 : i32
    %c0_i32_1 = arith.constant 0 : i32
    return %c0_i32, %c0_i32_0 : i32, i32
  }
  func.func @transform_7(%arg0: i32) -> (i32, i32) {
    %c0_i32 = arith.constant 0 : i32
    %c0_i32_0 = arith.constant 0 : i32
    %c0_i32_1 = arith.constant 0 : i32
    return %c0_i32, %c0_i32_0 : i32, i32
  }
}

</mosaic_0001>

<bundles_post_ra>
// kernel: gcn_forward.1
= control target key start
LH: loop header
LB: loop body
LE: loop exit
PB: predicated region body
PF: predicated region fallthrough
CT: control target
= control target key end

     0   :  { %s1540_s2 = inlined_call_operand.vmem [shape: bf16[128,128], index: 2, kind: input, shape index: {}]   ;;  %s1541_s1 = inlined_call_operand.vmem [shape: bf16[128,128], index: 1, kind: input, shape index: {}]   ;;  %s1542_s0 = inlined_call_operand.vmem [shape: bf16[128,128], index: 0, kind: input, shape index: {}]   ;;  %s1543_s4 = inlined_call_operand.vmem [shape: bf16[128,128], index: 4, kind: input, shape index: {}]   ;;  %s1544_s3 = inlined_call_operand.vmem [shape: f32[1,128], index: 3, kind: input, shape index: {}]   ;;  %s1545_s5 = inlined_call_operand.vmem [shape: bf16[128,128], index: 5, kind: input, shape index: {}]   ;;  %s1546_s6 = inlined_call_operand.vmem [shape: f32[1,128], index: 6, kind: input, shape index: {}]   ;;  %s1547_s7 = inlined_call_operand.vmem [shape: f32[128,128], index: 7, kind: output, shape index: {}]  }
   0x1   :  { %v1212_v0 = vld [vmem:[%s1540_s2] sm:$0xff]   ;;  %v1213_v1 = vld [vmem:[%s1540_s2 + $0x8] sm:$0xff]   ;;  %v1214_v2 = vld [vmem:[%s1540_s2 + $0x10] sm:$0xff]  }
   0x2   :  { %1036 = vmatprep.subr.bf16.mxu0 %v1212_v0  ;;  %v1215_v3 = vld [vmem:[%s1540_s2 + $0x18] sm:$0xff]   ;;  %v1220_v4 = vld [vmem:[%s1541_s1] sm:$0xff]   ;;  %v1217_v6 = vld [vmem:[%s1540_s2 + $0x28] sm:$0xff]  }
   0x3   :  { %1037 = vmatpush3.bf16.msra.mxu0 %v1212_v0  ;;  %1052 = vmatprep.mubr.bf16.mxu0 %v1220_v4  ;;  %v1216_v5 = vld [vmem:[%s1540_s2 + $0x20] sm:$0xff]   ;;  %v1218_v7 = vld [vmem:[%s1540_s2 + $0x30] sm:$0xff]   ;;  %v1219_v8 = vld [vmem:[%s1540_s2 + $0x38] sm:$0xff]  }
   0x4   :  { %1038 = vmatprep.subr.bf16.mxu0 %v1213_v1  ;;  %v1221_v9 = vld [vmem:[%s1541_s1 + $0x8] sm:$0xff]   ;;  %v1222_v10 = vld [vmem:[%s1541_s1 + $0x10] sm:$0xff]   ;;  %v1223_v11 = vld [vmem:[%s1541_s1 + $0x18] sm:$0xff]  }
   0x5   :  { %v1224_v12 = vld [vmem:[%s1541_s1 + $0x20] sm:$0xff]   ;;  %v1225_v13 = vld [vmem:[%s1541_s1 + $0x28] sm:$0xff]   ;;  %v1226_v14 = vld [vmem:[%s1541_s1 + $0x30] sm:$0xff]  }
   0x6   :  { %v1227_v15 = vld [vmem:[%s1541_s1 + $0x38] sm:$0xff]   ;;  %v1343_v16 = vld [vmem:[%s1542_s0] sm:$0xff]   ;;  %v1237_v18 = vld [vmem:[%s1543_s4 + $0x8] sm:$0xff]  }
   0x7   :  { %1039 = vmatpush3.bf16.msra.mxu0 %v1213_v1  ;;  %1084 = vmatprep.mubr.bf16.mxu1 %v1343_v16  ;;  %v1236_v17 = vld [vmem:[%s1543_s4] sm:$0xff]   ;;  %v1238_v19 = vld [vmem:[%s1543_s4 + $0x10] sm:$0xff]   ;;  %v1239_v20 = vld [vmem:[%s1543_s4 + $0x18] sm:$0xff]  }
   0x8   :  { %1040 = vmatprep.subr.bf16.mxu0 %v1214_v2  ;;  %v1240_v21 = vld [vmem:[%s1543_s4 + $0x20] sm:$0xff]   ;;  %v1241_v22 = vld [vmem:[%s1543_s4 + $0x28] sm:$0xff]   ;;  %v1372_v48 = vld [vmem:[%s1542_s0 + $0x10] sm:$0xff]  }
   0x9   :  { %v1367_v47 = vld [vmem:[%s1542_s0 + $0x8] sm:$0xff]   ;;  %v1379_v49 = vld [vmem:[%s1542_s0 + $0x18] sm:$0xff]   ;;  %v1384_v50 = vld [vmem:[%s1542_s0 + $0x20] sm:$0xff]  }
   0xa   :  { %v1391_v51 = vld [vmem:[%s1542_s0 + $0x28] sm:$0xff]   ;;  %v1396_v52 = vld [vmem:[%s1542_s0 + $0x30] sm:$0xff]   ;;  %v1403_v53 = vld [vmem:[%s1542_s0 + $0x38] sm:$0xff]  }
   0xb   :  { %1041 = vmatpush3.bf16.msra.mxu0 %v1214_v2  ;;  %v1242_v54 = vld [vmem:[%s1543_s4 + $0x30] sm:$0xff]   ;;  %v1243_v55 = vld [vmem:[%s1543_s4 + $0x38] sm:$0xff]   ;;  %v930_v56 = vld [vmem:[%s1544_s3] ss:$0 sm:$0xff] }
   0xc   :  { %1042 = vmatprep.subr.bf16.mxu0 %v1215_v3 }
   0xf   :  { %1043 = vmatpush3.bf16.msra.mxu0 %v1215_v3 }
  0x10   :  { %1044 = vmatprep.subr.bf16.mxu0 %v1216_v5 }
  0x13   :  { %1045 = vmatpush3.bf16.msra.mxu0 %v1216_v5 }
  0x14   :  { %1046 = vmatprep.subr.bf16.mxu0 %v1217_v6 }
  0x17   :  { %1047 = vmatpush3.bf16.msra.mxu0 %v1217_v6 }
  0x18   :  { %1048 = vmatprep.subr.bf16.mxu0 %v1218_v7 }
  0x1b   :  { %1049 = vmatpush3.bf16.msra.mxu0 %v1218_v7 }
  0x1c   :  { %1050 = vmatprep.subr.bf16.mxu0 %v1219_v8 }
  0x1f   :  { %1051 = vmatpush3.bf16.msra.mxu0 %v1219_v8 }
  0x20   :  { %1100 = vmatprep.subr.bf16.mxu0 %v1236_v17 }
  0x22   :  { %1053 = vmatmul.mubr.bf16.vlgmr.msra.gmra.mrb[0].mxu0 %v1221_v9 }
  0x23   :  { %1056 = vmatprep.mubr.bf16.mxu0 %v1222_v10  ;;  %1101 = vmatpush3.bf16.msra.mxu0 %v1236_v17 }
  0x24   :  { %1102 = vmatprep.subr.bf16.mxu0 %v1237_v18 }
  0x27   :  { %1103 = vmatpush3.bf16.msra.mxu0 %v1237_v18 }
  0x28   :  { %1104 = vmatprep.subr.bf16.mxu0 %v1238_v19 }
  0x2a   :  { %1057 = vmatmul.mubr.bf16.gmra.mrb[4].mxu0 %v1223_v11 }
  0x2b   :  { %1060 = vmatprep.mubr.bf16.mxu0 %v1224_v12  ;;  %1105 = vmatpush3.bf16.msra.mxu0 %v1238_v19 }
  0x2c   :  { %1106 = vmatprep.subr.bf16.mxu0 %v1239_v20 }
  0x2f   :  { %1107 = vmatpush3.bf16.msra.mxu0 %v1239_v20 }
  0x30   :  { %1108 = vmatprep.subr.bf16.mxu0 %v1240_v21 }
  0x32   :  { %1061 = vmatmul.mubr.bf16.gmra.mrb[8].mxu0 %v1225_v13 }
  0x33   :  { %1064 = vmatprep.mubr.bf16.mxu0 %v1226_v14  ;;  %1109 = vmatpush3.bf16.msra.mxu0 %v1240_v21 }
  0x34   :  { %1110 = vmatprep.subr.bf16.mxu0 %v1241_v22 }
  0x37   :  { %1111 = vmatpush3.bf16.msra.mxu0 %v1241_v22 }
  0x38   :  { %1112 = vmatprep.subr.bf16.mxu0 %v1242_v54 }
  0x3a   :  { %1065 = vmatmul.mubr.bf16.gmra.mrb[12].mxu0 %v1227_v15 }
  0x3b   :  { %1113 = vmatpush3.bf16.msra.mxu0 %v1242_v54 }
  0x3c   :  { %1114 = vmatprep.subr.bf16.mxu0 %v1243_v55 }
  0x3f   :  { %1115 = vmatpush3.bf16.msra.mxu0 %v1243_v55 }
  0xf5   :  { %v1054_v23 = vpop.f32.mrb[0].mxu0 }
  0xf6   :  { %v205_v24 = vpop.f32.mrb[1].mxu0 }
  0xf7   :  { %v1055_v25 = vpop.f32.mrb[2].mxu0 }
  0xf8   :  { %v269_v26 = vpack.c.bf16 %v1055_v25, %v1054_v23  ;;  %v208_v27 = vpop.f32.mrb[3].mxu0 }
  0xf9   :  { %v268_v28 = vpack.c.bf16 %v208_v27, %v205_v24 }
  0xfb   :  { %1068 = vmatprep.subr.bf16.mxu1 %v268_v28 }
  0xfc   :  { %1069 = vmatpush3.bf16.msra.mxu1 %v268_v28 }
  0xfd   :  { %v1058_v29 = vpop.f32.mrb[4].mxu0  ;;  %1070 = vmatprep.subr.bf16.mxu1 %v269_v26 }
  0xfe   :  { %v221_v30 = vpop.f32.mrb[5].mxu0 }
  0xff   :  { %v1059_v31 = vpop.f32.mrb[6].mxu0 }
 0x100   :  { %v271_v32 = vpack.c.bf16 %v1059_v31, %v1058_v29  ;;  %v224_v33 = vpop.f32.mrb[7].mxu0  ;;  %1071 = vmatpush3.bf16.msra.mxu1 %v269_v26 }
 0x101   :  { %v270_v34 = vpack.c.bf16 %v224_v33, %v221_v30 }
 0x103   :  { %1072 = vmatprep.subr.bf16.mxu1 %v270_v34 }
 0x104   :  { %1073 = vmatpush3.bf16.msra.mxu1 %v270_v34 }
 0x105   :  { %v1062_v35 = vpop.f32.mrb[8].mxu0  ;;  %1074 = vmatprep.subr.bf16.mxu1 %v271_v32 }
 0x106   :  { %v237_v36 = vpop.f32.mrb[9].mxu0 }
 0x107   :  { %v1063_v37 = vpop.f32.mrb[10].mxu0 }
 0x108   :  { %v273_v38 = vpack.c.bf16 %v1063_v37, %v1062_v35  ;;  %v240_v39 = vpop.f32.mrb[11].mxu0  ;;  %1075 = vmatpush3.bf16.msra.mxu1 %v271_v32 }
 0x109   :  { %v272_v40 = vpack.c.bf16 %v240_v39, %v237_v36 }
 0x10b   :  { %1076 = vmatprep.subr.bf16.mxu1 %v272_v40 }
 0x10c   :  { %1077 = vmatpush3.bf16.msra.mxu1 %v272_v40 }
 0x10d   :  { %v1066_v41 = vpop.f32.mrb[12].mxu0  ;;  %1078 = vmatprep.subr.bf16.mxu1 %v273_v38 }
 0x10e   :  { %v253_v42 = vpop.f32.mrb[13].mxu0 }
 0x10f   :  { %v1067_v43 = vpop.f32.mrb[14].mxu0 }
 0x110   :  { %v275_v44 = vpack.c.bf16 %v1067_v43, %v1066_v41  ;;  %v256_v45 = vpop.f32.mrb[15].mxu0  ;;  %1079 = vmatpush3.bf16.msra.mxu1 %v273_v38 }
 0x111   :  { %v274_v46 = vpack.c.bf16 %v256_v45, %v253_v42 }
 0x113   :  { %1080 = vmatprep.subr.bf16.mxu1 %v274_v46 }
 0x114   :  { %1081 = vmatpush3.bf16.msra.mxu1 %v274_v46 }
 0x115   :  { %1082 = vmatprep.subr.bf16.mxu1 %v275_v44 }
 0x118   :  { %1083 = vmatpush3.bf16.msra.mxu1 %v275_v44 }
 0x11b   :  { %1085 = vmatmul.mubr.bf16.vlgmr.msra.gmra.mrb[0].mxu1 %v1367_v47 }
 0x11c   :  { %1088 = vmatprep.mubr.bf16.mxu1 %v1372_v48 }
 0x123   :  { %1089 = vmatmul.mubr.bf16.gmra.mrb[4].mxu1 %v1379_v49 }
 0x124   :  { %1092 = vmatprep.mubr.bf16.mxu1 %v1384_v50 }
 0x12b   :  { %1093 = vmatmul.mubr.bf16.gmra.mrb[8].mxu1 %v1391_v51 }
 0x12c   :  { %1096 = vmatprep.mubr.bf16.mxu1 %v1396_v52 }
 0x133   :  { %1097 = vmatmul.mubr.bf16.gmra.mrb[12].mxu1 %v1403_v53 }
 0x134   :  { %1148 = vmatprep.mubr.bf16.mxu1 %v1343_v16 }
 0x1ee   :  { %v1086_v57 = vpop.f32.mrb[0].mxu1 }
 0x1ef   :  { %v374_v58 = vadd.f32 %v1086_v57, %v930_v56  ;;  %v365_v59 = vpop.f32.mrb[1].mxu1  ;;  %v1419_v57 = vld [vmem:[%s1545_s5] sm:$0xff]  }
 0x1f0   :  { %v366_v60 = vadd.f32 %v930_v56, %v365_v59  ;;  %v1087_v61 = vpop.f32.mrb[2].mxu1  ;;  %1164 = vmatprep.subr.bf16.mxu0 %v1419_v57  ;;  %v1439_v59 = vld [vmem:[%s1545_s5 + $0x18] sm:$0xff]  }
 0x1f1   :  { %v377_v62 = vadd.f32 %v1087_v61, %v930_v56  ;;  %v368_v63 = vpop.f32.mrb[3].mxu1  ;;  %v430_v1 = vmax.f32 %v374_v58, 0.0  ;;  %v1424_v58 = vld [vmem:[%s1545_s5 + $0x8] sm:$0xff]  }
 0x1f2   :  { %v369_v0 = vadd.f32 %v930_v56, %v368_v63  ;;  %v428_v3 = vmax.f32 %v366_v60, 0.0  ;;  %v1446_v60 = vld [vmem:[%s1545_s5 + $0x20] sm:$0xff]   ;;  %v1453_v61 = vld [vmem:[%s1545_s5 + $0x28] sm:$0xff]  }
 0x1f3   :  { %v431_v2 = vmax.f32 %v377_v62, 0.0  ;;  %v1460_v62 = vld [vmem:[%s1545_s5 + $0x30] sm:$0xff]  }
 0x1f4   :  { %v429_v4 = vmax.f32 %v369_v0, 0.0 }
 0x1f5   :  { %v445_v5 = vpack.c.bf16 %v431_v2, %v430_v1 }
 0x1f6   :  { %v444_v6 = vpack.c.bf16 %v429_v4, %v428_v3  ;;  %v1090_v7 = vpop.f32.mrb[4].mxu1 }
 0x1f7   :  { %v390_v8 = vadd.f32 %v1090_v7, %v930_v56  ;;  %v381_v9 = vpop.f32.mrb[5].mxu1 }
 0x1f8   :  { %v382_v10 = vadd.f32 %v930_v56, %v381_v9  ;;  %v1091_v11 = vpop.f32.mrb[6].mxu1  ;;  %1116 = vmatprep.mubr.bf16.mxu0 %v444_v6 }
 0x1f9   :  { %v393_v12 = vadd.f32 %v1091_v11, %v930_v56  ;;  %v384_v13 = vpop.f32.mrb[7].mxu1  ;;  %1117 = vmatmul.mubr.bf16.vlgmr.msra.gmra.mrb[16].mxu0 %v445_v5  ;;  %v434_v15 = vmax.f32 %v390_v8, 0.0 }
 0x1fa   :  { %v385_v14 = vadd.f32 %v930_v56, %v384_v13  ;;  %v432_v17 = vmax.f32 %v382_v10, 0.0  ;;  %1165 = vmatpush3.bf16.msra.mxu0 %v1419_v57 }
 0x1fb   :  { %v435_v16 = vmax.f32 %v393_v12, 0.0  ;;  %1166 = vmatprep.subr.bf16.mxu0 %v1424_v58 }
 0x1fc   :  { %v433_v18 = vmax.f32 %v385_v14, 0.0 }
 0x1fd   :  { %v447_v19 = vpack.c.bf16 %v435_v16, %v434_v15 }
 0x1fe   :  { %v446_v20 = vpack.c.bf16 %v433_v18, %v432_v17  ;;  %v1094_v21 = vpop.f32.mrb[8].mxu1  ;;  %1167 = vmatpush3.bf16.msra.mxu0 %v1424_v58 }
 0x1ff   :  { %v406_v22 = vadd.f32 %v1094_v21, %v930_v56  ;;  %v397_v23 = vpop.f32.mrb[9].mxu1 }
 0x200   :  { %v398_v24 = vadd.f32 %v930_v56, %v397_v23  ;;  %v1095_v25 = vpop.f32.mrb[10].mxu1  ;;  %1120 = vmatprep.mubr.bf16.mxu0 %v446_v20 }
 0x201   :  { %v409_v26 = vadd.f32 %v1095_v25, %v930_v56  ;;  %v400_v27 = vpop.f32.mrb[11].mxu1  ;;  %1121 = vmatmul.mubr.bf16.gmra.mrb[20].mxu0 %v447_v19  ;;  %v438_v29 = vmax.f32 %v406_v22, 0.0 }
 0x202   :  { %v401_v28 = vadd.f32 %v930_v56, %v400_v27  ;;  %v436_v31 = vmax.f32 %v398_v24, 0.0 }
 0x203   :  { %v439_v30 = vmax.f32 %v409_v26, 0.0 }
 0x204   :  { %v437_v32 = vmax.f32 %v401_v28, 0.0 }
 0x205   :  { %v449_v33 = vpack.c.bf16 %v439_v30, %v438_v29 }
 0x206   :  { %v448_v34 = vpack.c.bf16 %v437_v32, %v436_v31  ;;  %v1098_v35 = vpop.f32.mrb[12].mxu1 }
 0x207   :  { %v422_v36 = vadd.f32 %v1098_v35, %v930_v56  ;;  %v413_v37 = vpop.f32.mrb[13].mxu1 }
 0x208   :  { %v414_v38 = vadd.f32 %v930_v56, %v413_v37  ;;  %v1099_v39 = vpop.f32.mrb[14].mxu1  ;;  %1124 = vmatprep.mubr.bf16.mxu0 %v448_v34 }
 0x209   :  { %v425_v40 = vadd.f32 %v1099_v39, %v930_v56  ;;  %v416_v41 = vpop.f32.mrb[15].mxu1  ;;  %1125 = vmatmul.mubr.bf16.gmra.mrb[24].mxu0 %v449_v33  ;;  %v442_v43 = vmax.f32 %v422_v36, 0.0 }
 0x20a   :  { %v417_v42 = vadd.f32 %v930_v56, %v416_v41  ;;  %v440_v45 = vmax.f32 %v414_v38, 0.0  ;;  %v1432_v56 = vld [vmem:[%s1545_s5 + $0x10] sm:$0xff]   ;;  %v947_v41 = vld [vmem:[%s1546_s6] ss:$0 sm:$0xff] }
 0x20b   :  { %v443_v44 = vmax.f32 %v425_v40, 0.0  ;;  %1168 = vmatprep.subr.bf16.mxu0 %v1432_v56 }
 0x20c   :  { %v441_v46 = vmax.f32 %v417_v42, 0.0  ;;  %1169 = vmatpush3.bf16.msra.mxu0 %v1432_v56 }
 0x20d   :  { %v451_v54 = vpack.c.bf16 %v443_v44, %v442_v43  ;;  %1170 = vmatprep.subr.bf16.mxu0 %v1439_v59 }
 0x20e   :  { %v450_v55 = vpack.c.bf16 %v441_v46, %v440_v45 }
 0x210   :  { %1128 = vmatprep.mubr.bf16.mxu0 %v450_v55  ;;  %1171 = vmatpush3.bf16.msra.mxu0 %v1439_v59 }
 0x211   :  { %1129 = vmatmul.mubr.bf16.gmra.mrb[28].mxu0 %v451_v54  ;;  %1172 = vmatprep.subr.bf16.mxu0 %v1446_v60 }
 0x214   :  { %1173 = vmatpush3.bf16.msra.mxu0 %v1446_v60 }
 0x215   :  { %1174 = vmatprep.subr.bf16.mxu0 %v1453_v61 }
 0x218   :  { %1175 = vmatpush3.bf16.msra.mxu0 %v1453_v61 }
 0x219   :  { %1176 = vmatprep.subr.bf16.mxu0 %v1460_v62 }
 0x21c   :  { %1177 = vmatpush3.bf16.msra.mxu0 %v1460_v62 }
 0x2cc   :  { %v1118_v63 = vpop.f32.mrb[16].mxu0 }
 0x2cd   :  { %v550_v0 = vpop.f32.mrb[17].mxu0 }
 0x2ce   :  { %v1119_v1 = vpop.f32.mrb[18].mxu0 }
 0x2cf   :  { %v614_v2 = vpack.c.bf16 %v1119_v1, %v1118_v63  ;;  %v553_v3 = vpop.f32.mrb[19].mxu0 }
 0x2d0   :  { %v613_v4 = vpack.c.bf16 %v553_v3, %v550_v0 }
 0x2d2   :  { %1132 = vmatprep.subr.bf16.mxu1 %v613_v4 }
 0x2d3   :  { %1133 = vmatpush3.bf16.msra.mxu1 %v613_v4 }
 0x2d4   :  { %v1122_v5 = vpop.f32.mrb[20].mxu0  ;;  %1134 = vmatprep.subr.bf16.mxu1 %v614_v2 }
 0x2d5   :  { %v566_v6 = vpop.f32.mrb[21].mxu0 }
 0x2d6   :  { %v1123_v7 = vpop.f32.mrb[22].mxu0 }
 0x2d7   :  { %v616_v8 = vpack.c.bf16 %v1123_v7, %v1122_v5  ;;  %v569_v9 = vpop.f32.mrb[23].mxu0  ;;  %1135 = vmatpush3.bf16.msra.mxu1 %v614_v2 }
 0x2d8   :  { %v615_v10 = vpack.c.bf16 %v569_v9, %v566_v6 }
 0x2da   :  { %1136 = vmatprep.subr.bf16.mxu1 %v615_v10 }
 0x2db   :  { %1137 = vmatpush3.bf16.msra.mxu1 %v615_v10 }
 0x2dc   :  { %v1126_v11 = vpop.f32.mrb[24].mxu0  ;;  %1138 = vmatprep.subr.bf16.mxu1 %v616_v8 }
 0x2dd   :  { %v582_v12 = vpop.f32.mrb[25].mxu0 }
 0x2de   :  { %v1127_v13 = vpop.f32.mrb[26].mxu0 }
 0x2df   :  { %v618_v14 = vpack.c.bf16 %v1127_v13, %v1126_v11  ;;  %v585_v15 = vpop.f32.mrb[27].mxu0  ;;  %1139 = vmatpush3.bf16.msra.mxu1 %v616_v8 }
 0x2e0   :  { %v617_v16 = vpack.c.bf16 %v585_v15, %v582_v12 }
 0x2e2   :  { %1140 = vmatprep.subr.bf16.mxu1 %v617_v16 }
 0x2e3   :  { %1141 = vmatpush3.bf16.msra.mxu1 %v617_v16 }
 0x2e4   :  { %v1130_v17 = vpop.f32.mrb[28].mxu0  ;;  %1142 = vmatprep.subr.bf16.mxu1 %v618_v14 }
 0x2e5   :  { %v598_v18 = vpop.f32.mrb[29].mxu0 }
 0x2e6   :  { %v1131_v19 = vpop.f32.mrb[30].mxu0 }
 0x2e7   :  { %v620_v20 = vpack.c.bf16 %v1131_v19, %v1130_v17  ;;  %v601_v21 = vpop.f32.mrb[31].mxu0  ;;  %1143 = vmatpush3.bf16.msra.mxu1 %v618_v14 }
 0x2e8   :  { %v619_v22 = vpack.c.bf16 %v601_v21, %v598_v18 }
 0x2ea   :  { %1144 = vmatprep.subr.bf16.mxu1 %v619_v22 }
 0x2eb   :  { %1145 = vmatpush3.bf16.msra.mxu1 %v619_v22 }
 0x2ec   :  { %1146 = vmatprep.subr.bf16.mxu1 %v620_v20 }
 0x2ef   :  { %1147 = vmatpush3.bf16.msra.mxu1 %v620_v20 }
 0x2f0   :  { %1196 = vmatprep.subr.bf16.mxu1 %v1419_v57 }
 0x2f2   :  { %1149 = vmatmul.mubr.bf16.vlgmr.msra.gmra.mrb[16].mxu1 %v1367_v47  ;;  %v1251_v47 = vld [vmem:[%s1545_s5 + $0x38] sm:$0xff]  }
 0x2f3   :  { %1152 = vmatprep.mubr.bf16.mxu1 %v1372_v48  ;;  %1204 = vmatpush3.bf16.msra.mxu1 %v1419_v57 }
 0x2f4   :  { %1197 = vmatprep.subr.bf16.mxu1 %v1424_v58  ;;  %1178 = vmatprep.subr.bf16.mxu0 %v1251_v47 }
 0x2f5   :  { %1179 = vmatpush3.bf16.msra.mxu0 %v1251_v47 }
 0x2f7   :  { %1205 = vmatpush3.bf16.msra.mxu1 %v1424_v58 }
 0x2f8   :  { %1198 = vmatprep.subr.bf16.mxu1 %v1432_v56 }
 0x2fa   :  { %1153 = vmatmul.mubr.bf16.gmra.mrb[20].mxu1 %v1379_v49 }
 0x2fb   :  { %1156 = vmatprep.mubr.bf16.mxu1 %v1384_v50  ;;  %1206 = vmatpush3.bf16.msra.mxu1 %v1432_v56 }
 0x2fc   :  { %1199 = vmatprep.subr.bf16.mxu1 %v1439_v59 }
 0x2ff   :  { %1207 = vmatpush3.bf16.msra.mxu1 %v1439_v59 }
 0x300   :  { %1200 = vmatprep.subr.bf16.mxu1 %v1446_v60 }
 0x302   :  { %1157 = vmatmul.mubr.bf16.gmra.mrb[24].mxu1 %v1391_v51 }
 0x303   :  { %1160 = vmatprep.mubr.bf16.mxu1 %v1396_v52  ;;  %1208 = vmatpush3.bf16.msra.mxu1 %v1446_v60 }
 0x304   :  { %1201 = vmatprep.subr.bf16.mxu1 %v1453_v61 }
 0x307   :  { %1209 = vmatpush3.bf16.msra.mxu1 %v1453_v61 }
 0x308   :  { %1202 = vmatprep.subr.bf16.mxu1 %v1460_v62 }
 0x30a   :  { %1161 = vmatmul.mubr.bf16.gmra.mrb[28].mxu1 %v1403_v53 }
 0x30b   :  { %1210 = vmatpush3.bf16.msra.mxu1 %v1460_v62 }
 0x30c   :  { %1203 = vmatprep.subr.bf16.mxu1 %v1251_v47 }
 0x30f   :  { %1211 = vmatpush3.bf16.msra.mxu1 %v1251_v47 }
 0x3c5   :  { %v1150_v48 = vpop.f32.mrb[16].mxu1 }
 0x3c6   :  { %v655_v49 = vpop.f32.mrb[17].mxu1 }
 0x3c7   :  { %v1151_v50 = vpop.f32.mrb[18].mxu1 }
 0x3c8   :  { %v719_v51 = vpack.c.bf16 %v1151_v50, %v1150_v48  ;;  %v658_v52 = vpop.f32.mrb[19].mxu1 }
 0x3c9   :  { %v718_v23 = vpack.c.bf16 %v658_v52, %v655_v49 }
 0x3cb   :  { %1180 = vmatprep.mubr.bf16.mxu0 %v718_v23 }
 0x3cc   :  { %1181 = vmatmul.mubr.bf16.vlgmr.msra.gmra.mrb[32].mxu0 %v719_v51 }
 0x3cd   :  { %v1154_v24 = vpop.f32.mrb[20].mxu1 }
 0x3ce   :  { %v671_v53 = vpop.f32.mrb[21].mxu1 }
 0x3cf   :  { %v1155_v25 = vpop.f32.mrb[22].mxu1 }
 0x3d0   :  { %v721_v26 = vpack.c.bf16 %v1155_v25, %v1154_v24  ;;  %v674_v27 = vpop.f32.mrb[23].mxu1 }
 0x3d1   :  { %v720_v28 = vpack.c.bf16 %v674_v27, %v671_v53 }
 0x3d3   :  { %1184 = vmatprep.mubr.bf16.mxu0 %v720_v28 }
 0x3d4   :  { %1185 = vmatmul.mubr.bf16.gmra.mrb[36].mxu0 %v721_v26 }
 0x3d5   :  { %v1158_v29 = vpop.f32.mrb[24].mxu1 }
 0x3d6   :  { %v687_v30 = vpop.f32.mrb[25].mxu1 }
 0x3d7   :  { %v1159_v31 = vpop.f32.mrb[26].mxu1 }
 0x3d8   :  { %v723_v32 = vpack.c.bf16 %v1159_v31, %v1158_v29  ;;  %v690_v33 = vpop.f32.mrb[27].mxu1 }
 0x3d9   :  { %v722_v34 = vpack.c.bf16 %v690_v33, %v687_v30 }
 0x3db   :  { %1188 = vmatprep.mubr.bf16.mxu1 %v722_v34 }
 0x3dc   :  { %1189 = vmatmul.mubr.bf16.vlgmr.msra.gmra.mrb[32].mxu1 %v723_v32 }
 0x3dd   :  { %v1162_v35 = vpop.f32.mrb[28].mxu1 }
 0x3de   :  { %v703_v36 = vpop.f32.mrb[29].mxu1 }
 0x3df   :  { %v1163_v37 = vpop.f32.mrb[30].mxu1 }
 0x3e0   :  { %v725_v38 = vpack.c.bf16 %v1163_v37, %v1162_v35  ;;  %v706_v39 = vpop.f32.mrb[31].mxu1 }
 0x3e1   :  { %v724_v40 = vpack.c.bf16 %v706_v39, %v703_v36 }
 0x3e3   :  { %1192 = vmatprep.mubr.bf16.mxu1 %v724_v40 }
 0x3e4   :  { %1193 = vmatmul.mubr.bf16.gmra.mrb[36].mxu1 %v725_v38 }
 0x49f   :  { %v1182_v42 = vpop.f32.mrb[32].mxu0 }
 0x4a0   :  { %v840_v43 = vadd.f32 %v1182_v42, %v947_v41  ;;  %v831_v44 = vpop.f32.mrb[33].mxu0 }
 0x4a1   :  { %v832_v45 = vadd.f32 %v947_v41, %v831_v44  ;;  %v1183_v46 = vpop.f32.mrb[34].mxu0 }
 0x4a2   :  { %896 = vst [vmem:[%s1547_s7 + $0x10] sm:$0xff] %v840_v43  ;;  %v843_v54 = vadd.f32 %v1183_v46, %v947_v41  ;;  %v834_v55 = vpop.f32.mrb[35].mxu0 }
 0x4a3   :  { %894 = vst [vmem:[%s1547_s7] sm:$0xff] %v832_v45  ;;  %v835_v57 = vadd.f32 %v947_v41, %v834_v55 }
 0x4a4   :  { %897 = vst [vmem:[%s1547_s7 + $0x18] sm:$0xff] %v843_v54 }
 0x4a5   :  { %895 = vst [vmem:[%s1547_s7 + $0x8] sm:$0xff] %v835_v57 }
 0x4a7   :  { %v1186_v58 = vpop.f32.mrb[36].mxu0 }
 0x4a8   :  { %v856_v56 = vadd.f32 %v1186_v58, %v947_v41  ;;  %v847_v59 = vpop.f32.mrb[37].mxu0 }
 0x4a9   :  { %v848_v60 = vadd.f32 %v947_v41, %v847_v59  ;;  %v1187_v61 = vpop.f32.mrb[38].mxu0 }
 0x4aa   :  { %900 = vst [vmem:[%s1547_s7 + $0x30] sm:$0xff] %v856_v56  ;;  %v859_v62 = vadd.f32 %v1187_v61, %v947_v41  ;;  %v850_v63 = vpop.f32.mrb[39].mxu0 }
 0x4ab   :  { %898 = vst [vmem:[%s1547_s7 + $0x20] sm:$0xff] %v848_v60  ;;  %v851_v0 = vadd.f32 %v947_v41, %v850_v63 }
 0x4ac   :  { %901 = vst [vmem:[%s1547_s7 + $0x38] sm:$0xff] %v859_v62 }
 0x4ad   :  { %899 = vst [vmem:[%s1547_s7 + $0x28] sm:$0xff] %v851_v0 }
 0x4af   :  { %v1190_v1 = vpop.f32.mrb[32].mxu1 }
 0x4b0   :  { %v872_v2 = vadd.f32 %v1190_v1, %v947_v41  ;;  %v863_v3 = vpop.f32.mrb[33].mxu1 }
 0x4b1   :  { %v864_v4 = vadd.f32 %v947_v41, %v863_v3  ;;  %v1191_v5 = vpop.f32.mrb[34].mxu1 }
 0x4b2   :  { %904 = vst [vmem:[%s1547_s7 + $0x50] sm:$0xff] %v872_v2  ;;  %v875_v6 = vadd.f32 %v1191_v5, %v947_v41  ;;  %v866_v7 = vpop.f32.mrb[35].mxu1 }
 0x4b3   :  { %902 = vst [vmem:[%s1547_s7 + $0x40] sm:$0xff] %v864_v4  ;;  %v867_v8 = vadd.f32 %v947_v41, %v866_v7 }
 0x4b4   :  { %905 = vst [vmem:[%s1547_s7 + $0x58] sm:$0xff] %v875_v6 }
 0x4b5   :  { %903 = vst [vmem:[%s1547_s7 + $0x48] sm:$0xff] %v867_v8 }
 0x4b7   :  { %v1194_v9 = vpop.f32.mrb[36].mxu1 }
 0x4b8   :  { %v888_v10 = vadd.f32 %v1194_v9, %v947_v41  ;;  %v879_v11 = vpop.f32.mrb[37].mxu1 }
 0x4b9   :  { %v880_v12 = vadd.f32 %v947_v41, %v879_v11  ;;  %v1195_v13 = vpop.f32.mrb[38].mxu1 }
 0x4ba   :  { %908 = vst [vmem:[%s1547_s7 + $0x70] sm:$0xff] %v888_v10  ;;  %v891_v14 = vadd.f32 %v1195_v13, %v947_v41  ;;  %v882_v15 = vpop.f32.mrb[39].mxu1 }
 0x4bb   :  { %906 = vst [vmem:[%s1547_s7 + $0x60] sm:$0xff] %v880_v12  ;;  %v883_v16 = vadd.f32 %v947_v41, %v882_v15 }
 0x4bc   :  { %909 = vst [vmem:[%s1547_s7 + $0x78] sm:$0xff] %v891_v14 }
 0x4bd   :  { %907 = vst [vmem:[%s1547_s7 + $0x68] sm:$0xff] %v883_v16 }

</bundles_post_ra>
